<compile_context>
chip_gen: v7x
topology: tpu7x:2x2x1
jax: 0.10.0
libtpu: 0.0.40
codegen_flags: <defaults>
</compile_context>

<pallas_src>
import functools

import numpy as np
import jax
import jax.numpy as jnp
from jax.experimental import pallas as pl
from jax.experimental.pallas import tpu as pltpu


LANE = 128
SUB = 8
_DEFAULT_TB = 128            # batch tile (clamped to the actual batch)
_VMEM_TILE_BUDGET = 40 << 20  # v7x-safe (64 MiB/TC); v5e/v6e (128 MiB) have headroom
_VMEM_LIMIT = 48 << 20


def _round_up(x, m):
    return ((x + m - 1) // m) * m


def _mxu_pad(n):
    # v6e/v7x MXUs are 2x256x256: align dims >=256 to 256; keep small dims at 128
    # (optimal on v5e's 4x128x128 and avoids padding waste for tiny embeddings).
    return _round_up(n, 256) if n >= 256 else _round_up(n, LANE)


def _reduction_tile(F, D_pad, H_pad, tb=_DEFAULT_TB):
    """Pick tk as large as possible (fewer grid steps, bigger DMAs) while the
    double-buffered x(f32)/w(bf16)/lab(bf16) blocks + acc + out fit the v7x budget."""
    tk = _round_up(min(4096, _round_up(F, LANE)), LANE)

    def footprint(t):
        return (2 * tb * t * 4              # x blocks (f32, cast to bf16 in-kernel)
                + 2 * t * D_pad * 2         # w blocks (bf16)
                + 2 * D_pad * 2 * H_pad * 2  # resident fused labels (bf16)
                + tb * D_pad * 4            # accumulator scratch
                + 2 * tb * H_pad * 4)       # output blocks

    while tk > LANE and footprint(tk) > _VMEM_TILE_BUDGET:
        tk = _round_up(tk // 2, LANE)
    return tk


def sim_classifier_kernel(scale_ref, x_ref, w_ref, lab_ref, o_ref, acc_ref, *, h_pad):
    """One (batch-tile i, reduction-tile k) grid step.

    scale_ref : [1, 1]            SMEM, exp(logit_scale)
    x_ref     : [tb, tk]          f32 flattened-image block (cast to bf16 in-VMEM)
    w_ref     : [tk, D_pad]       bf16 image-encoder stand-in projection block
    lab_ref   : [D_pad, 2*H_pad]  bf16 fused, pre-transposed [pos | neg] label embeds
    o_ref     : [tb, H_pad]       f32 output block (written on last k only)
    acc_ref   : [tb, D_pad]       f32 accumulator scratch (persists across k)
    """
    k = pl.program_id(1)

    @pl.when(k == 0)
    def _():
        acc_ref[...] = jnp.zeros_like(acc_ref)

    # --- image embedding stand-in: bf16 MXU operands, f32 accumulation ---
    acc_ref[...] += jnp.dot(x_ref[...].astype(jnp.bfloat16), w_ref[...],
                            preferred_element_type=jnp.float32)

    @pl.when(k == pl.num_programs(1) - 1)
    def _():
        im = acc_ref[...]                                            # [tb, D_pad]
        # im / im.norm(dim=1, keepdim=True)  (rsqrt on EUP; eps only keeps zero
        # padded rows NaN-free, negligible for real inputs)
        inv = jax.lax.rsqrt(jnp.sum(im * im, axis=1, keepdims=True) + 1e-30)
        im_n = (im * inv).astype(jnp.bfloat16)                       # [tb, D_pad]

        # Fused (pos | neg) head matmul, bf16 x bf16 -> f32 on the MXU.
        logits = jnp.dot(im_n, lab_ref[...],
                         preferred_element_type=jnp.float32)          # [tb, 2*H_pad]
        pos = logits[:, :h_pad]
        neg = logits[:, h_pad:]

        # softmax over stacked (pos, neg) pair; positive slot == sigmoid(pos - neg)
        prob = pl.reciprocal(1.0 + jnp.exp(neg - pos), approx=True)   # [tb, H_pad]

        o_ref[...] = scale_ref[0, 0] * prob


def prepare_sim_classifier_params(w_proj, label_embeds, neg_label_embeds, logit_scale):
    """One-time parameter prep (pad + bf16 cast).  These are module parameters, so
    this cost is paid once, not on every forward call."""
    F, D = w_proj.shape
    NH = label_embeds.shape[0]
    D_pad = _mxu_pad(D)
    H_pad = _round_up(NH, LANE)
    tk = _reduction_tile(F, D_pad, H_pad)
    F_pad = _round_up(F, tk)

    w_p = jnp.zeros((F_pad, D_pad), jnp.bfloat16).at[:F, :D].set(
        w_proj.astype(jnp.bfloat16))
    # Pre-transposed, fused [pos | neg] label operand in bf16: [D_pad, 2*H_pad].
    lab = jnp.zeros((D_pad, 2 * H_pad), jnp.bfloat16)
    lab = lab.at[:D, :NH].set(label_embeds.T.astype(jnp.bfloat16))
    lab = lab.at[:D, H_pad:H_pad + NH].set(neg_label_embeds.T.astype(jnp.bfloat16))
    scale = jnp.exp(logit_scale).reshape(1, 1).astype(jnp.float32)

    meta = dict(F=F, D=D, NH=NH, tk=tk, F_pad=F_pad, D_pad=D_pad, H_pad=H_pad)
    return (w_p, lab, scale), meta


def sim_classifier_forward(image, params, meta, *, tb=_DEFAULT_TB):
    """image: [B, C, H, W] (NCHW).  Returns [B, num_heads] float32."""
    w_p, lab, scale = params
    B = image.shape[0]
    F, NH = meta["F"], meta["NH"]
    tk, F_pad, D_pad, H_pad = meta["tk"], meta["F_pad"], meta["D_pad"], meta["H_pad"]
    assert int(np.prod(image.shape[1:])) == F

    # Batch tile: >= 8-sublane aligned, clamped to the batch.  On 2-TC chips (v7x)
    # prefer >=2 parallel batch tiles when the batch is big enough.
    tb = _round_up(min(max(tb, SUB), _round_up(B, SUB)), SUB)
    B_pad = _round_up(B, tb)
    if B_pad == tb and tb % 16 == 0:
        tb //= 2                       # give the second TensorCore a batch tile

    # x stays f32; jnp.pad is a no-op when shapes already align and XLA can fuse it
    # otherwise.  The kernel casts f32 -> bf16 in-VMEM just before the MXU.
    x = image.reshape(B, F).astype(jnp.float32)
    x_p = jnp.pad(x, ((0, B_pad - B), (0, F_pad - F)))

    grid = (B_pad // tb, F_pad // tk)
    n_btiles = grid[0]
    kernel = functools.partial(sim_classifier_kernel, h_pad=H_pad)

    cost = pl.CostEstimate(
        flops=2 * B_pad * F_pad * D_pad + 2 * B_pad * D_pad * (2 * H_pad),
        transcendentals=B_pad * H_pad + B_pad,
        bytes_accessed=(B_pad * F_pad * 4                # x (f32, streamed once)
                        + n_btiles * F_pad * D_pad * 2   # w re-streamed per batch tile
                        + D_pad * 2 * H_pad * 2          # fused labels (bf16, resident)
                        + B_pad * H_pad * 4),            # output
    )

    out_padded = pl.pallas_call(
        kernel,
        out_shape=jax.ShapeDtypeStruct((B_pad, H_pad), jnp.float32),
        grid_spec=pltpu.PrefetchScalarGridSpec(
            num_scalar_prefetch=0,
            grid=grid,
            in_specs=[
                pl.BlockSpec((1, 1), lambda i, k: (0, 0),
                             memory_space=pltpu.MemorySpace.SMEM),      # exp(logit_scale)
                pl.BlockSpec((tb, tk), lambda i, k: (i, k)),            # x  [B_pad, F_pad] f32
                pl.BlockSpec((tk, D_pad), lambda i, k: (k, 0)),         # w  [F_pad, D_pad] bf16
                pl.BlockSpec((D_pad, 2 * H_pad), lambda i, k: (0, 0)),  # fused labels, bf16
            ],
            out_specs=pl.BlockSpec((tb, H_pad), lambda i, k: (i, 0)),
            scratch_shapes=[pltpu.VMEM((tb, D_pad), jnp.float32)],
        ),
        compiler_params=pltpu.CompilerParams(
            dimension_semantics=("parallel", "arbitrary"),
            vmem_limit_bytes=_VMEM_LIMIT,   # v7x-safe; tiles were budgeted to ~40 MiB
        ),
        cost_estimate=cost,
    )(scale, x_p, w_p, lab)

    return out_padded[:B, :NH]


if __name__ == "__main__":
    # Small deterministic shapes consistent with the forward pass.
    B, C, H, W = 2, 4, 16, 16          # image: NCHW
    D = 32                             # CLIP embedding dim
    NUM_HEADS = 8                      # number of label heads

    key = jax.random.PRNGKey(0)
    k_img, k_w, k_lab, k_neg = jax.random.split(key, 4)

    image = jax.random.normal(k_img, (B, C, H, W), dtype=jnp.float32)

    # Deterministic parameter init (synthetic, no checkpoint load).
    w_proj = jax.random.normal(k_w, (C * H * W, D), dtype=jnp.float32) * 0.02

    # TODO(synk): getLabelEmbeddings' CSV + text-encoder pipeline is replaced by
    # synthetic per-head text embeddings.
    label_raw = jax.random.normal(k_lab, (NUM_HEADS, D), dtype=jnp.float32)
    neg_raw = jax.random.normal(k_neg, (NUM_HEADS, D), dtype=jnp.float32)

    # Match __init__ exactly:
    #   label_embeds     = label / label.norm(dim=1, keepdim=True)
    #   neg_label_embeds = neg   / label.norm(dim=1, keepdim=True)   (pos norm!)
    lab_norm = jnp.linalg.norm(label_raw, axis=1, keepdims=True)
    label_embeds = label_raw / lab_norm
    neg_label_embeds = neg_raw / lab_norm

    # nn.Parameter(torch.ones([]) * np.log(1 / 0.07))
    logit_scale = jnp.array(np.log(1.0 / 0.07), dtype=jnp.float32)

    params, meta = prepare_sim_classifier_params(
        w_proj, label_embeds, neg_label_embeds, logit_scale)
    out = sim_classifier_forward(image, params, meta)
    out = jax.block_until_ready(out)

    # --- pure numpy (float64) reference of the same math, with the kernel's bf16
    #     rounding of the MXU operands applied ---
    def _bf16(a):
        return np.asarray(
            jnp.asarray(a, jnp.float32).astype(jnp.bfloat16).astype(jnp.float32),
            np.float64)

    x_np = _bf16(image.reshape(B, -1))
    w_np = _bf16(w_proj)
    im = x_np @ w_np
    im_n = im / np.linalg.norm(im, axis=1, keepdims=True)
    im_n = _bf16(im_n)
    pos = im_n @ _bf16(label_embeds).T
    neg = im_n @ _bf16(neg_label_embeds).T
    ref = np.exp(float(logit_scale)) * (np.exp(pos) / (np.exp(pos) + np.exp(neg)))

    np.testing.assert_allclose(np.asarray(out), ref, rtol=1e-2, atol=1e-2)
    assert out.shape == (B, NUM_HEADS)
    print("KERNEL_OK")
</pallas_src>

<mosaic_0001>
module attributes {stable_mosaic.version = 11 : i64} {
  func.func @sim_classifier_kernel(%arg0: i32, %arg1: i32, %arg2: memref<1x1xf32, #tpu.memory_space<smem>>, %arg3: memref<8x1024xf32, #tpu.memory_space<vmem>>, %arg4: memref<1024x128xbf16, #tpu.memory_space<vmem>>, %arg5: memref<128x256xbf16, #tpu.memory_space<vmem>>, %arg6: memref<8x128xf32, #tpu.memory_space<vmem>>, %arg7: memref<8x128xf32, #tpu.memory_space<vmem>>) attributes {dimension_semantics = [#tpu.dimension_semantics<parallel>, #tpu.dimension_semantics<arbitrary>], iteration_bounds = array<i64: 1, 1>, scalar_prefetch = 0 : i64, scratch_operands = 1 : i64, tpu.core_type = #tpu.core_type<tc>, window_params = [{transform_indices = @transform_0, window_bounds = array<i64: 1, 1>}, {transform_indices = @transform_1, window_bounds = array<i64: 8, 1024>}, {transform_indices = @transform_2, window_bounds = array<i64: 1024, 128>}, {pipeline_mode = #tpu.pipeline_mode<synchronous>, transform_indices = @transform_3, window_bounds = array<i64: 128, 256>}, {transform_indices = @transform_4, window_bounds = array<i64: 8, 128>}]} {
    %c0_i32 = arith.constant 0 : i32
    %0 = arith.cmpi eq, %arg1, %c0_i32 : i32
    %1 = arith.extui %0 : i1 to i32
    %c0_i32_0 = arith.constant 0 : i32
    %2 = arith.cmpi ne, %1, %c0_i32_0 : i32
    scf.if %2 {
      %cst_10 = arith.constant 0.000000e+00 : f32
      %13 = vector.broadcast %cst_10 : f32 to vector<8x128xf32>
      %c0_11 = arith.constant 0 : index
      %c0_12 = arith.constant 0 : index
      %14 = vector.load %arg7[%c0_11, %c0_12] : memref<8x128xf32, #tpu.memory_space<vmem>>, vector<8x128xf32>
      tpu.vector_store %arg7[%c0_11, %c0_12], %13 {strides = array<i32>} : memref<8x128xf32, #tpu.memory_space<vmem>>, vector<8x128xf32>,
    } else {
    }
    %c0 = arith.constant 0 : index
    %c0_1 = arith.constant 0 : index
    %3 = vector.load %arg7[%c0, %c0_1] : memref<8x128xf32, #tpu.memory_space<vmem>>, vector<8x128xf32>
    %c0_2 = arith.constant 0 : index
    %c0_3 = arith.constant 0 : index
    %4 = vector.load %arg3[%c0_2, %c0_3] : memref<8x1024xf32, #tpu.memory_space<vmem>>, vector<8x1024xf32>
    %5 = arith.truncf %4 : vector<8x1024xf32> to vector<8x1024xbf16>
    %c0_4 = arith.constant 0 : index
    %c0_5 = arith.constant 0 : index
    %6 = vector.load %arg4[%c0_4, %c0_5] : memref<1024x128xbf16, #tpu.memory_space<vmem>>, vector<1024x128xbf16>
    %cst = arith.constant dense<0.000000e+00> : vector<8x128xf32>
    %7 = tpu.matmul %5, %6, %cst {dimension_numbers = #tpu.dot_dimension_numbers<[1], [0], [0], [1], [0, 0, 1, 1], [], []>} : vector<8x1024xbf16>, vector<1024x128xbf16>, vector<8x128xf32> -> vector<8x128xf32>
    %8 = arith.addf %3, %7 : vector<8x128xf32>
    %c0_6 = arith.constant 0 : index
    %c0_7 = arith.constant 0 : index
    %9 = vector.load %arg7[%c0_6, %c0_7] : memref<8x128xf32, #tpu.memory_space<vmem>>, vector<8x128xf32>
    tpu.vector_store %arg7[%c0_6, %c0_7], %8 {strides = array<i32>} : memref<8x128xf32, #tpu.memory_space<vmem>>, vector<8x128xf32>,
    %c0_i32_8 = arith.constant 0 : i32
    %10 = arith.cmpi eq, %arg1, %c0_i32_8 : i32
    %11 = arith.extui %10 : i1 to i32
    %c0_i32_9 = arith.constant 0 : i32
    %12 = arith.cmpi ne, %11, %c0_i32_9 : i32
    scf.if %12 {
      %c0_10 = arith.constant 0 : index
      %c0_11 = arith.constant 0 : index
      %13 = vector.load %arg7[%c0_10, %c0_11] : memref<8x128xf32, #tpu.memory_space<vmem>>, vector<8x128xf32>
      %14 = arith.mulf %13, %13 : vector<8x128xf32>
      %cst_12 = arith.constant dense<0.000000e+00> : vector<8xf32>
      %15 = vector.multi_reduction <add>, %14, %cst_12 [1] : vector<8x128xf32> to vector<8xf32>
      %16 = vector.shape_cast %15 : vector<8xf32> to vector<8x1xf32>
      %cst_13 = arith.constant 1.000000e-30 : f32
      %17 = vector.broadcast %cst_13 : f32 to vector<8x1xf32>
      %18 = arith.addf %16, %17 : vector<8x1xf32>
      %19 = math.rsqrt %18 : vector<8x1xf32>
      %20 = vector.broadcast %19 : vector<8x1xf32> to vector<8x128xf32>
      %21 = arith.mulf %13, %20 : vector<8x128xf32>
      %22 = arith.truncf %21 : vector<8x128xf32> to vector<8x128xbf16>
      %c0_14 = arith.constant 0 : index
      %c0_15 = arith.constant 0 : index
      %23 = vector.load %arg5[%c0_14, %c0_15] : memref<128x256xbf16, #tpu.memory_space<vmem>>, vector<128x256xbf16>
      %cst_16 = arith.constant dense<0.000000e+00> : vector<8x256xf32>
      %24 = tpu.matmul %22, %23, %cst_16 {dimension_numbers = #tpu.dot_dimension_numbers<[1], [0], [0], [1], [0, 0, 1, 1], [], []>} : vector<8x128xbf16>, vector<128x256xbf16>, vector<8x256xf32> -> vector<8x256xf32>
      %25 = vector.extract_strided_slice %24 {offsets = [0, 0], sizes = [8, 128], strides = [1, 1]} : vector<8x256xf32> to vector<8x128xf32>
      %26 = vector.extract_strided_slice %24 {offsets = [0, 128], sizes = [8, 128], strides = [1, 1]} : vector<8x256xf32> to vector<8x128xf32>
      %27 = arith.subf %26, %25 : vector<8x128xf32>
      %28 = math.exp %27 : vector<8x128xf32>
      %cst_17 = arith.constant 1.000000e+00 : f32
      %29 = vector.broadcast %cst_17 : f32 to vector<8x128xf32>
      %30 = arith.addf %29, %28 : vector<8x128xf32>
      %31 = tpu.reciprocal %30 {approx = true} : vector<8x128xf32> -> vector<8x128xf32>
      %c0_18 = arith.constant 0 : index
      %c0_19 = arith.constant 0 : index
      %32 = memref.load %arg2[%c0_18, %c0_19] : memref<1x1xf32, #tpu.memory_space<smem>>
      %33 = vector.broadcast %32 : f32 to vector<8x128xf32>
      %34 = arith.mulf %33, %31 : vector<8x128xf32>
      %c0_20 = arith.constant 0 : index
      %c0_21 = arith.constant 0 : index
      %35 = vector.load %arg6[%c0_20, %c0_21] : memref<8x128xf32, #tpu.memory_space<vmem>>, vector<8x128xf32>
      tpu.vector_store %arg6[%c0_20, %c0_21], %34 {strides = array<i32>} : memref<8x128xf32, #tpu.memory_space<vmem>>, vector<8x128xf32>,
    } else {
    }
    return
  }
  func.func @transform_0(%arg0: i32, %arg1: i32) -> (i32, i32) {
    %c0_i32 = arith.constant 0 : i32
    %c0_i32_0 = arith.constant 0 : i32
    %c0_i32_1 = arith.constant 0 : i32
    return %c0_i32, %c0_i32_0 : i32, i32
  }
  func.func @transform_1(%arg0: i32, %arg1: i32) -> (i32, i32) {
    %c0_i32 = arith.constant 0 : i32
    return %arg0, %arg1 : i32, i32
  }
  func.func @transform_2(%arg0: i32, %arg1: i32) -> (i32, i32) {
    %c0_i32 = arith.constant 0 : i32
    %c0_i32_0 = arith.constant 0 : i32
    return %arg1, %c0_i32 : i32, i32
  }
  func.func @transform_3(%arg0: i32, %arg1: i32) -> (i32, i32) {
    %c0_i32 = arith.constant 0 : i32
    %c0_i32_0 = arith.constant 0 : i32
    %c0_i32_1 = arith.constant 0 : i32
    return %c0_i32, %c0_i32_0 : i32, i32
  }
  func.func @transform_4(%arg0: i32, %arg1: i32) -> (i32, i32) {
    %c0_i32 = arith.constant 0 : i32
    %c0_i32_0 = arith.constant 0 : i32
    return %arg0, %c0_i32 : i32, i32
  }
}

</mosaic_0001>

<bundles_post_ra>
// kernel: tpu_custom_call.1
= control target key start
LH: loop header
LB: loop body
LE: loop exit
PB: predicated region body
PF: predicated region fallthrough
CT: control target
= control target key end

     0   :  { %10 = vsyncpa [#allocation5], 0  ;;  %s1378_s0 = inlined_call_operand.<no memory space> [shape: f32[1,1], index: 0, kind: input, shape index: {}]   ;;  %s1379_s1 = inlined_call_operand.hbm [shape: f32[8,1024], index: 1, kind: input, shape index: {}]   ;;  %s1380_s2 = inlined_call_operand.hbm [shape: bf16[1024,128], index: 2, kind: input, shape index: {}]   ;;  %s1381_s3 = inlined_call_operand.hbm [shape: bf16[128,256], index: 3, kind: input, shape index: {}]   ;;  %s1382_s4 = inlined_call_operand.hbm [shape: f32[8,128], index: 4, kind: output, shape index: {}]  }
   0x1   :  { %11 = vsyncpa [#allocation8], 0 }
   0x2   :  { %12 = vsyncpa [#allocation6], 0  ;;  %s1293_s15 = smov [#allocation7]   ;;  %s1199_s19 = scalar_lea.hbm %s1380_s2, 8192 }
   0x3   :  { %s30_s16 = sshll.u32 %s1293_s15, 4  ;;  %p1200_p0 = scmp.ne.s32.totalorder %s1380_s2, %s1199_s19  ;;  %s31_s16 = int_to_ptr.vmem [resolvable:$true] %s30_s16 }
   0x4   :  { %p1203_p1 = scmp.lt.u32.totalorder %s1199_s19, %s1380_s2 }
   0x6   :  { %p1205_p2 = pnand %p1203_p1, %p1200_p0 }
   0x8   :  { %1208 = shalt.err (!%p1205_p2)
}
   0x9   :  { %s1209_s24 = scalar_lea.vmem %s31_s16, 8192  ;;  %p1214_p4 = scmp.lt.s32.totalorder %s31_s16, %s31_s16 }
   0xa   :  { %p1210_p3 = scmp.ne.s32.totalorder %s31_s16, %s1209_s24  ;;  %p1215_p5 = scmp.lt.s32.totalorder %s1209_s24, %s1209_s24 }
   0xc   :  { %p1216_p6 = por %p1215_p5, %p1214_p4 }
   0xe   :  { %p1217_p7 = pnand %p1216_p6, %p1210_p3 }
  0x10   :  { %1220 = shalt.err (!%p1217_p7)
}
  0x11   :  { %s1294_s25 = smov 64   ;;  %s1295_s26 = smov 4  }
  0x12   :  { %36 = dma.hbm_to_vmem [thread:$0]  %s1380_s2, 8192, %s31_s16, [#allocation8], %s1294_s25, %s1294_s25, %s1295_s26  }
  0x13   :  { %s1296_s29 = smov [#allocation4]   ;;  %s1297_s5 = smov [#allocation9]  }
  0x14   :  { %s21_s30 = sshll.u32 %s1296_s29, 4  ;;  %s42_s6 = sshll.u32 %s1297_s5, 4  ;;  %s22_s30 = int_to_ptr.vmem [resolvable:$true] %s21_s30  ;;  %s43_s6 = int_to_ptr.vmem [resolvable:$true] %s42_s6 }
  0x15   :  { %s1221_s9 = scalar_lea.hbm %s1379_s1, 1024 }
  0x16   :  { %p1222_p8 = scmp.ne.s32.totalorder %s1379_s1, %s1221_s9  ;;  %p1225_p9 = scmp.lt.u32.totalorder %s1221_s9, %s1379_s1 }
  0x18   :  { %p1227_p10 = pnand %p1225_p9, %p1222_p8 }
  0x1a   :  { %1230 = shalt.err (!%p1227_p10)
}
  0x1b   :  { %s1231_s2 = scalar_lea.vmem %s22_s30, 1024  ;;  %p1236_p12 = scmp.lt.s32.totalorder %s22_s30, %s22_s30 }
  0x1c   :  { %p1232_p11 = scmp.ne.s32.totalorder %s22_s30, %s1231_s2  ;;  %p1237_p13 = scmp.lt.s32.totalorder %s1231_s2, %s1231_s2 }
  0x1e   :  { %p1238_p0 = por %p1237_p13, %p1236_p12 }
  0x20   :  { %p1239_p1 = pnand %p1238_p0, %p1232_p11 }
  0x22   :  { %1242 = shalt.err (!%p1239_p1)
}
  0x23   :  { %24 = dma.hbm_to_vmem [thread:$0]  %s1379_s1, 1024, %s22_s30, [#allocation5]  }
  0x24   :  { %s1243_s18 = scalar_lea.hbm %s1381_s3, 2048 }
  0x25   :  { %p1244_p2 = scmp.ne.s32.totalorder %s1381_s3, %s1243_s18  ;;  %p1247_p3 = scmp.lt.u32.totalorder %s1243_s18, %s1381_s3 }
  0x27   :  { %p1249_p4 = pnand %p1247_p3, %p1244_p2 }
  0x29   :  { %1252 = shalt.err (!%p1249_p4)
}
  0x2a   :  { %s1253_s23 = scalar_lea.vmem %s43_s6, 2048  ;;  %p1258_p6 = scmp.lt.s32.totalorder %s43_s6, %s43_s6 }
  0x2b   :  { %p1254_p5 = scmp.ne.s32.totalorder %s43_s6, %s1253_s23  ;;  %p1259_p7 = scmp.lt.s32.totalorder %s1253_s23, %s1253_s23 }
  0x2d   :  { %p1260_p8 = por %p1259_p7, %p1258_p6 }
  0x2f   :  { %p1261_p9 = pnand %p1260_p8, %p1254_p5 }
  0x31   :  { %1264 = shalt.err (!%p1261_p9)
}
  0x32   :  { %s1298_s1 = smov 128   ;;  %s1299_s24 = smov 8  }
  0x33   :  { %48 = dma.hbm_to_vmem [thread:$0]  %s1381_s3, 2048, %s43_s6, [#allocation8], %s1298_s1, %s1298_s1, %s1299_s24  }
  0x34   :  { %1287 = dma.done.wait [#allocation5], 1024  }
  0x35   :  { %1288 = vsyncadd [#allocation5], 4294966272 }
  0x36   :  { %1289 = dma.done.wait [#allocation8], 10240  }
  0x37   :  { %1290 = vsyncadd [#allocation8], 4294957056  ;;  %v1105_v0 = vld [vmem:[#allocation7 + $0x40] sm:$0xff]   ;;  %v1109_v4 = vld [vmem:[#allocation7 + $0x48] sm:$0xff]   ;;  %s1301_s28 = smov [#allocation10]  }
  0x38   :  { %v1106_v1 = vld [vmem:[#allocation7 + $0xc0] sm:$0xff]   ;;  %1008 = vmatprep.subr.bf16.mxu0 %v1105_v0  ;;  %v1110_v5 = vld [vmem:[#allocation7 + $0xc8] sm:$0xff]   ;;  %v1113_v8 = vld [vmem:[#allocation7 + $0x50] sm:$0xff]   ;;  %s918_s29 = sshll.u32 %s1301_s28, 4  ;;  %s919_s29 = int_to_ptr.vmem [resolvable:$true] %s918_s29 }
  0x39   :  { %v1107_v2 = vld [vmem:[#allocation7] sm:$0xff]   ;;  %1030 = vmatprep.subr.bf16.mxu1 %v1106_v1  ;;  %v1111_v6 = vld [vmem:[#allocation7 + $0x8] sm:$0xff]   ;;  %v1114_v9 = vld [vmem:[#allocation7 + $0xd0] sm:$0xff]   ;;  %s1265_s30 = scalar_lea.vmem %s919_s29, 128  ;;  %p1270_p11 = scmp.lt.s32.totalorder %s919_s29, %s919_s29 }
  0x3a   :  { %v1108_v3 = vld [vmem:[#allocation7 + $0x80] sm:$0xff]   ;;  %1009 = vmatpush3.bf16.msra.mxu0 %v1107_v2  ;;  %v1112_v7 = vld [vmem:[#allocation7 + $0x88] sm:$0xff]   ;;  %v1115_v10 = vld [vmem:[#allocation7 + $0x10] sm:$0xff]   ;;  %p1266_p10 = scmp.ne.s32.totalorder %s919_s29, %s1265_s30  ;;  %p1271_p12 = scmp.lt.s32.totalorder %s1265_s30, %s1265_s30 }
  0x3b   :  { %1031 = vmatpush3.bf16.msra.mxu1 %v1108_v3  ;;  %1010 = vmatprep.subr.bf16.mxu0 %v1109_v4  ;;  %v1116_v11 = vld [vmem:[#allocation7 + $0x90] sm:$0xff]   ;;  %v1117_v12 = vld [vmem:[#allocation7 + $0x58] sm:$0xff]   ;;  %v1121_v16 = vld [vmem:[#allocation7 + $0x60] sm:$0xff]  }
  0x3c   :  { %1032 = vmatprep.subr.bf16.mxu1 %v1110_v5  ;;  %v1118_v13 = vld [vmem:[#allocation7 + $0xd8] sm:$0xff]   ;;  %v1122_v17 = vld [vmem:[#allocation7 + $0xe0] sm:$0xff]   ;;  %v1125_v20 = vld [vmem:[#allocation7 + $0x68] sm:$0xff]   ;;  %p1272_p13 = por %p1271_p12, %p1270_p11 }
  0x3d   :  { %v1119_v14 = vld [vmem:[#allocation7 + $0x18] sm:$0xff]   ;;  %v1123_v18 = vld [vmem:[#allocation7 + $0x20] sm:$0xff]   ;;  %v1126_v21 = vld [vmem:[#allocation7 + $0xe8] sm:$0xff]  }
  0x3e   :  { %1011 = vmatpush3.bf16.msra.mxu0 %v1111_v6  ;;  %v1120_v15 = vld [vmem:[#allocation7 + $0x98] sm:$0xff]   ;;  %v1124_v19 = vld [vmem:[#allocation7 + $0xa0] sm:$0xff]   ;;  %v1127_v22 = vld [vmem:[#allocation7 + $0x28] sm:$0xff]   ;;  %p1273_p0 = pnand %p1272_p13, %p1266_p10 }
  0x3f   :  { %1033 = vmatpush3.bf16.msra.mxu1 %v1112_v7  ;;  %1012 = vmatprep.subr.bf16.mxu0 %v1113_v8  ;;  %v1128_v23 = vld [vmem:[#allocation7 + $0xa8] sm:$0xff]   ;;  %v1129_v24 = vld [vmem:[#allocation7 + $0x70] sm:$0xff]   ;;  %v1133_v28 = vld [vmem:[#allocation7 + $0x78] sm:$0xff]  }
  0x40   :  { %1034 = vmatprep.subr.bf16.mxu1 %v1114_v9  ;;  %v1130_v25 = vld [vmem:[#allocation7 + $0xf0] sm:$0xff]   ;;  %v1134_v29 = vld [vmem:[#allocation7 + $0xf8] sm:$0xff]   ;;  %v66_v32 = vld [vmem:[#allocation4 + $0x8] sm:$0xff] }
  0x41   :  { %v1131_v26 = vld [vmem:[#allocation7 + $0x30] sm:$0xff]   ;;  %v1135_v30 = vld [vmem:[#allocation7 + $0x38] sm:$0xff]   ;;  %v65_v34 = vld [vmem:[#allocation4] sm:$0xff]  ;;  %v74_v35 = vpack.c.bf16 %v66_v32, %v66_v32 }
  0x42   :  { %1013 = vmatpush3.bf16.msra.mxu0 %v1115_v10  ;;  %v1132_v27 = vld [vmem:[#allocation7 + $0xb0] sm:$0xff]   ;;  %v1136_v31 = vld [vmem:[#allocation7 + $0xb8] sm:$0xff]   ;;  %v73_v37 = vpack.c.bf16 %v65_v34, %v65_v34  ;;  %v1137_v40 = vld [vmem:[#allocation7 + $0x140] sm:$0xff]  }
  0x43   :  { %1035 = vmatpush3.bf16.msra.mxu1 %v1116_v11  ;;  %1014 = vmatprep.subr.bf16.mxu0 %v1117_v12  ;;  %v68_v33 = vld [vmem:[#allocation4 + $0x18] sm:$0xff]  ;;  %v67_v38 = vld [vmem:[#allocation4 + $0x10] sm:$0xff]  ;;  %v1138_v41 = vld [vmem:[#allocation7 + $0x1c0] sm:$0xff]  }
  0x44   :  { %1036 = vmatprep.subr.bf16.mxu1 %v1118_v13  ;;  %v76_v36 = vpack.c.bf16 %v68_v33, %v68_v33  ;;  %v75_v39 = vpack.c.bf16 %v67_v38, %v67_v38  ;;  %625 = vmatprep.mubr.bf16.mxu0 %v74_v35  ;;  %v1139_v42 = vld [vmem:[#allocation7 + $0x100] sm:$0xff]   ;;  %v1141_v44 = vld [vmem:[#allocation7 + $0x148] sm:$0xff]   ;;  %v1145_v48 = vld [vmem:[#allocation7 + $0x150] sm:$0xff]  }
  0x45   :  { %v1140_v43 = vld [vmem:[#allocation7 + $0x180] sm:$0xff]   ;;  %v1142_v45 = vld [vmem:[#allocation7 + $0x1c8] sm:$0xff]   ;;  %v1146_v49 = vld [vmem:[#allocation7 + $0x1d0] sm:$0xff]  }
  0x46   :  { %1015 = vmatpush3.bf16.msra.mxu0 %v1119_v14  ;;  %665 = vmatprep.mubr.bf16.mxu1 %v76_v36  ;;  %v1143_v46 = vld [vmem:[#allocation7 + $0x108] sm:$0xff]   ;;  %v1147_v50 = vld [vmem:[#allocation7 + $0x110] sm:$0xff]   ;;  %v1149_v52 = vld [vmem:[#allocation7 + $0x158] sm:$0xff]  }
  0x47   :  { %1037 = vmatpush3.bf16.msra.mxu1 %v1120_v15  ;;  %1016 = vmatprep.subr.bf16.mxu0 %v1121_v16  ;;  %v1144_v47 = vld [vmem:[#allocation7 + $0x188] sm:$0xff]   ;;  %v1148_v51 = vld [vmem:[#allocation7 + $0x190] sm:$0xff]   ;;  %v1150_v53 = vld [vmem:[#allocation7 + $0x1d8] sm:$0xff]  }
  0x48   :  { %1038 = vmatprep.subr.bf16.mxu1 %v1122_v17  ;;  %v1151_v54 = vld [vmem:[#allocation7 + $0x118] sm:$0xff]   ;;  %v1153_v56 = vld [vmem:[#allocation7 + $0x160] sm:$0xff]   ;;  %v1157_v60 = vld [vmem:[#allocation7 + $0x168] sm:$0xff]  }
  0x49   :  { %v1152_v55 = vld [vmem:[#allocation7 + $0x198] sm:$0xff]   ;;  %v1154_v57 = vld [vmem:[#allocation7 + $0x1e0] sm:$0xff]   ;;  %v1158_v61 = vld [vmem:[#allocation7 + $0x1e8] sm:$0xff]  }
  0x4a   :  { %1017 = vmatpush3.bf16.msra.mxu0 %v1123_v18  ;;  %v1155_v58 = vld [vmem:[#allocation7 + $0x120] sm:$0xff]   ;;  %v1159_v62 = vld [vmem:[#allocation7 + $0x128] sm:$0xff]   ;;  %v1161_v0 = vld [vmem:[#allocation7 + $0x170] sm:$0xff]  }
  0x4b   :  { %1039 = vmatpush3.bf16.msra.mxu1 %v1124_v19  ;;  %1018 = vmatprep.subr.bf16.mxu0 %v1125_v20  ;;  %v1156_v59 = vld [vmem:[#allocation7 + $0x1a0] sm:$0xff]   ;;  %v1160_v63 = vld [vmem:[#allocation7 + $0x1a8] sm:$0xff]   ;;  %v1162_v1 = vld [vmem:[#allocation7 + $0x1f0] sm:$0xff]  }
  0x4c   :  { %1040 = vmatprep.subr.bf16.mxu1 %v1126_v21  ;;  %v1163_v2 = vld [vmem:[#allocation7 + $0x130] sm:$0xff]   ;;  %v1165_v4 = vld [vmem:[#allocation7 + $0x178] sm:$0xff]   ;;  %v70_v8 = vld [vmem:[#allocation4 + $0x28] sm:$0xff] }
  0x4d   :  { %v1164_v3 = vld [vmem:[#allocation7 + $0x1b0] sm:$0xff]   ;;  %v1166_v5 = vld [vmem:[#allocation7 + $0x1f8] sm:$0xff]   ;;  %v78_v10 = vpack.c.bf16 %v70_v8, %v70_v8  ;;  %v69_v12 = vld [vmem:[#allocation4 + $0x20] sm:$0xff] }
  0x4e   :  { %1019 = vmatpush3.bf16.msra.mxu0 %v1127_v22  ;;  %v1167_v6 = vld [vmem:[#allocation7 + $0x138] sm:$0xff]   ;;  %v71_v13 = vld [vmem:[#allocation4 + $0x30] sm:$0xff]  ;;  %v77_v14 = vpack.c.bf16 %v69_v12, %v69_v12  ;;  %v1169_v16 = vld [vmem:[#allocation9] ss:$8 sps:$4 sm:$0xff]  }
  0x4f   :  { %1041 = vmatpush3.bf16.msra.mxu1 %v1128_v23  ;;  %1020 = vmatprep.subr.bf16.mxu0 %v1129_v24  ;;  %v1168_v7 = vld [vmem:[#allocation7 + $0x1b8] sm:$0xff]   ;;  %v79_v15 = vpack.c.bf16 %v71_v13, %v71_v13  ;;  %v1171_v17 = vld [vmem:[#allocation9 + $0x4] ss:$8 sps:$4 sm:$0xff]   ;;  %v1175_v21 = vld [vmem:[#allocation9 + $0x20] ss:$8 sps:$4 sm:$0xff]  }
  0x50   :  { %1042 = vmatprep.subr.bf16.mxu1 %v1130_v25  ;;  %v72_v9 = vld [vmem:[#allocation4 + $0x38] sm:$0xff]  ;;  %v1177_v20 = vld [vmem:[#allocation9 + $0x24] ss:$8 sps:$4 sm:$0xff]  }
  0x51   :  { %v80_v11 = vpack.c.bf16 %v72_v9, %v72_v9  ;;  %v1174_v18 = vld [vmem:[#allocation9 + $0x14] ss:$8 sps:$4 sm:$0xff]   ;;  %v1172_v19 = vld [vmem:[#allocation9 + $0x10] ss:$8 sps:$4 sm:$0xff]  }
  0x52   :  { %1021 = vmatpush3.bf16.msra.mxu0 %v1131_v26  ;;  %v1180_v22 = vld [vmem:[#allocation9 + $0x34] ss:$8 sps:$4 sm:$0xff]   ;;  %v1178_v23 = vld [vmem:[#allocation9 + $0x30] ss:$8 sps:$4 sm:$0xff]  }
  0x53   :  { %1043 = vmatpush3.bf16.msra.mxu1 %v1132_v27  ;;  %1022 = vmatprep.subr.bf16.mxu0 %v1133_v28 }
  0x54   :  { %1044 = vmatprep.subr.bf16.mxu1 %v1134_v29 }
  0x56   :  { %1023 = vmatpush3.bf16.msra.mxu0 %v1135_v30 }
  0x57   :  { %1045 = vmatpush3.bf16.msra.mxu1 %v1136_v31  ;;  %1052 = vmatprep.subr.bf16.mxu0 %v1137_v40 }
  0x58   :  { %1074 = vmatprep.subr.bf16.mxu1 %v1138_v41 }
  0x59   :  { %626 = vmatmul.mubr.bf16.vlgmr.msra.gmra.mrb[0].mxu0 %v73_v37 }
  0x5a   :  { %666 = vmatmul.mubr.bf16.vlgmr.msra.gmra.mrb[0].mxu1 %v75_v39  ;;  %1053 = vmatpush3.bf16.msra.mxu0 %v1139_v42 }
  0x5b   :  { %1075 = vmatpush3.bf16.msra.mxu1 %v1140_v43  ;;  %1054 = vmatprep.subr.bf16.mxu0 %v1141_v44 }
  0x5c   :  { %1076 = vmatprep.subr.bf16.mxu1 %v1142_v45  ;;  %705 = vmatprep.mubr.bf16.mxu0 %v78_v10 }
  0x5d   :  { %745 = vmatprep.mubr.bf16.mxu1 %v80_v11 }
  0x5e   :  { %1055 = vmatpush3.bf16.msra.mxu0 %v1143_v46 }
  0x5f   :  { %1077 = vmatpush3.bf16.msra.mxu1 %v1144_v47  ;;  %1056 = vmatprep.subr.bf16.mxu0 %v1145_v48  ;;  %v1183_v48 = vld [vmem:[#allocation9 + $0x44] ss:$8 sps:$4 sm:$0xff]  }
  0x60   :  { %1078 = vmatprep.subr.bf16.mxu1 %v1146_v49  ;;  %v1181_v49 = vld [vmem:[#allocation9 + $0x40] ss:$8 sps:$4 sm:$0xff]  }
  0x62   :  { %1057 = vmatpush3.bf16.msra.mxu0 %v1147_v50  ;;  %v1186_v50 = vld [vmem:[#allocation9 + $0x54] ss:$8 sps:$4 sm:$0xff]  }
  0x63   :  { %1079 = vmatpush3.bf16.msra.mxu1 %v1148_v51  ;;  %1058 = vmatprep.subr.bf16.mxu0 %v1149_v52  ;;  %v1184_v51 = vld [vmem:[#allocation9 + $0x50] ss:$8 sps:$4 sm:$0xff]   ;;  %v1189_v52 = vld [vmem:[#allocation9 + $0x64] ss:$8 sps:$4 sm:$0xff]  }
  0x64   :  { %1080 = vmatprep.subr.bf16.mxu1 %v1150_v53  ;;  %v1300_v53 = vmov 0  }
  0x66   :  { %1059 = vmatpush3.bf16.msra.mxu0 %v1151_v54  ;;  %v1187_v54 = vld [vmem:[#allocation9 + $0x60] ss:$8 sps:$4 sm:$0xff]  }
  0x67   :  { %1081 = vmatpush3.bf16.msra.mxu1 %v1152_v55  ;;  %1060 = vmatprep.subr.bf16.mxu0 %v1153_v56  ;;  %v1192_v55 = vld [vmem:[#allocation9 + $0x74] ss:$8 sps:$4 sm:$0xff]   ;;  %v1190_v56 = vld [vmem:[#allocation9 + $0x70] ss:$8 sps:$4 sm:$0xff]  }
  0x68   :  { %1082 = vmatprep.subr.bf16.mxu1 %v1154_v57 }
  0x6a   :  { %1061 = vmatpush3.bf16.msra.mxu0 %v1155_v58 }
  0x6b   :  { %1083 = vmatpush3.bf16.msra.mxu1 %v1156_v59  ;;  %1062 = vmatprep.subr.bf16.mxu0 %v1157_v60 }
  0x6c   :  { %1084 = vmatprep.subr.bf16.mxu1 %v1158_v61 }
  0x6e   :  { %1063 = vmatpush3.bf16.msra.mxu0 %v1159_v62 }
  0x6f   :  { %1085 = vmatpush3.bf16.msra.mxu1 %v1160_v63  ;;  %1064 = vmatprep.subr.bf16.mxu0 %v1161_v0 }
  0x70   :  { %1086 = vmatprep.subr.bf16.mxu1 %v1162_v1 }
  0x72   :  { %1065 = vmatpush3.bf16.msra.mxu0 %v1163_v2 }
  0x73   :  { %1087 = vmatpush3.bf16.msra.mxu1 %v1164_v3  ;;  %1066 = vmatprep.subr.bf16.mxu0 %v1165_v4 }
  0x74   :  { %1088 = vmatprep.subr.bf16.mxu1 %v1166_v5 }
  0x76   :  { %1067 = vmatpush3.bf16.msra.mxu0 %v1167_v6  ;;  %v909_v6 = vstv %s1378_s0 }
  0x77   :  { %1089 = vmatpush3.bf16.msra.mxu1 %v1168_v7  ;;  %862 = vmatprep.subr.bf16.mxu0 %v1171_v17 }
  0x79   :  { %706 = vmatmul.mubr.bf16.vlgmr.msra.gmra.mrb[4].mxu0 %v77_v14 }
  0x7a   :  { %746 = vmatmul.mubr.bf16.vlgmr.msra.gmra.mrb[4].mxu1 %v79_v15  ;;  %863 = vmatpush1.bf16.msra.mxu0 %v1169_v16 }
  0x7b   :  { %864 = vmatprep.subr.bf16.mxu0 %v1174_v18  ;;  %894 = vmatprep.mubr.bf16.mxu0 %v1300_v53 }
  0x7e   :  { %865 = vmatpush1.bf16.msra.mxu0 %v1172_v19 }
  0x7f   :  { %866 = vmatprep.subr.bf16.mxu0 %v1177_v20 }
  0x82   :  { %867 = vmatpush1.bf16.msra.mxu0 %v1175_v21 }
  0x83   :  { %868 = vmatprep.subr.bf16.mxu0 %v1180_v22 }
  0x86   :  { %869 = vmatpush1.bf16.msra.mxu0 %v1178_v23 }
  0x87   :  { %870 = vmatprep.subr.bf16.mxu0 %v1183_v48 }
  0x8a   :  { %871 = vmatpush1.bf16.msra.mxu0 %v1181_v49 }
  0x8b   :  { %872 = vmatprep.subr.bf16.mxu0 %v1186_v50 }
  0x8e   :  { %873 = vmatpush1.bf16.msra.mxu0 %v1184_v51 }
  0x8f   :  { %874 = vmatprep.subr.bf16.mxu0 %v1189_v52 }
  0x92   :  { %875 = vmatpush1.bf16.msra.mxu0 %v1187_v54 }
  0x93   :  { %876 = vmatprep.subr.bf16.mxu0 %v1192_v55 }
  0x96   :  { %877 = vmatpush1.bf16.msra.mxu0 %v1190_v56 }
 0x12c   :  { %v1024_v24 = vpop.f32.mrb[0].mxu0 }
 0x12d   :  { %v1046_v25 = vpop.f32.mrb[0].mxu1  ;;  %v1025_v26 = vpop.f32.mrb[1].mxu0 }
 0x12e   :  { %v1047_v27 = vpop.f32.mrb[1].mxu1  ;;  %v1026_v28 = vadd.f32 %v1025_v26, %v1024_v24  ;;  %v1027_v30 = vpop.f32.mrb[2].mxu0 }
 0x12f   :  { %v1048_v29 = vadd.f32 %v1047_v27, %v1046_v25  ;;  %v1049_v31 = vpop.f32.mrb[2].mxu1  ;;  %v1028_v32 = vpop.f32.mrb[3].mxu0 }
 0x130   :  { %v1050_v33 = vpop.f32.mrb[3].mxu1 }
 0x131   :  { %v668_v34 = vadd.f32 %v1048_v29, %v1026_v28 }
 0x14c   :  { %v1068_v35 = vpop.f32.mrb[4].mxu0 }
 0x14d   :  { %v1090_v36 = vpop.f32.mrb[4].mxu1  ;;  %v1069_v37 = vpop.f32.mrb[5].mxu0 }
 0x14e   :  { %v1070_v38 = vadd.f32 %v1069_v37, %v1068_v35  ;;  %v1091_v39 = vpop.f32.mrb[5].mxu1  ;;  %v1071_v40 = vpop.f32.mrb[6].mxu0 }
 0x14f   :  { %v1092_v41 = vadd.f32 %v1091_v39, %v1090_v36  ;;  %v1093_v42 = vpop.f32.mrb[6].mxu1  ;;  %v1072_v43 = vpop.f32.mrb[7].mxu0 }
 0x150   :  { %v708_v44 = vadd.f32 %v1070_v38, %v668_v34  ;;  %v1094_v45 = vpop.f32.mrb[7].mxu1 }
 0x152   :  { %v748_v46 = vadd.f32 %v1092_v41, %v708_v44 }
 0x154   :  { %v759_v47 = vmul.f32 %v748_v46, %v748_v46 }
 0x156   :  { %760 = vadd.xlane.f32.xlu0 %v759_v47 }
 0x1e3   :  { %v761_v57 = vpop.xlane.xlu0 %760 }
 0x1e4   :  { %v762_v58 = vadd.f32 1e-30, %v761_v57 }
 0x1e6   :  { %1193 = vrsqrt.f32 %v762_v58 }
 0x1f0   :  { %v1194_v59 = vpop.eup %1193 }
 0x1f1   :  { %v764_v60 = vmul.f32 %v1194_v59, %v748_v46 }
 0x1f3   :  { %v765_v61 = vpack.c.bf16 %v764_v60, %v764_v60 }
 0x1f5   :  { %895 = vmatmul.mubr.bf16.vlgmr.msra.gmra.mrb[8].mxu0 %v765_v61 }
 0x2c8   :  { %v896_v62 = vpop.f32.mrb[8].mxu0 }
 0x2c9   :  { %v898_v63 = vpop.f32.mrb[9].mxu0 }
 0x2ca   :  { %v903_v0 = vsub.f32 %v898_v63, %v896_v62  ;;  %v900_v1 = vpop.f32.mrb[10].mxu0 }
 0x2cb   :  { %v901_v2 = vpop.f32.mrb[11].mxu0 }
 0x2cc   :  { %v904_v3 = vmul.f32 1.442695, %v903_v0 }
 0x2ce   :  { %1195 = vpow2.f32 %v904_v3 }
 0x2d8   :  { %v1196_v4 = vpop.eup %1195 }
 0x2d9   :  { %v906_v5 = vadd.f32 1.0, %v1196_v4 }
 0x2db   :  { %1197 = vrcp.f32 %v906_v5 }
 0x2e5   :  { %v1198_v7 = vpop.eup %1197 }
 0x2e6   :  { %v910_v8 = vmul.f32 %v1198_v7, %v909_v6 }
 0x2e8   :  { %911 = vst [vmem:[#allocation10] sm:$0xff] %v910_v8 }
 0x2e9   :  { %1276 = shalt.err (!%p1273_p0)
}
 0x2ea   :  { %s1277_s7 = scalar_lea.hbm %s1382_s4, 128 }
 0x2eb   :  { %p1278_p1 = scmp.ne.s32.totalorder %s1382_s4, %s1277_s7  ;;  %p1281_p2 = scmp.lt.u32.totalorder %s1277_s7, %s1382_s4 }
 0x2ed   :  { %p1283_p3 = pnand %p1281_p2, %p1278_p1 }
 0x2ef   :  { %1286 = shalt.err (!%p1283_p3)
}
 0x2f0   :  { %921 = dma.vmem_to_hbm [thread:$0]  %s919_s29, 128, %s1382_s4, [#allocation6]  }
 0x2f1   :  { %1291 = dma.done.wait [#allocation6], 128  }
 0x2f2   :  { %1292 = vsyncadd [#allocation6], 4294967168 }
 0x2f3   :  { %925 = vsyncpa [#allocation5], 1 }
 0x2f4   :  { %926 = vsyncpa [#allocation8], 1 }
 0x2f5   :  { %927 = vsyncpa [#allocation6], 1 }

</bundles_post_ra>
